<compile_context>
chip_gen: v7x
topology: tpu7x:2x2x1
jax: 0.10.0
libtpu: 0.0.40
codegen_flags: <defaults>
</compile_context>

<pallas_src>
import math

import jax
import jax.numpy as jnp
from jax.experimental import pallas as pl
from jax.experimental.pallas import tpu as pltpu


def timesteps_kernel(t_ref, freqs_ref, phase_ref, o_ref):
    """t_ref: (TB, 1) f32; freqs_ref/phase_ref: (1, C) f32; o_ref: (TB, C) f32.

    out[b, j] = sin(t[b] * freqs[j] + phase[j])
    with phase = pi/2 on the first half (== cos) and 0 on the second (== sin).
    """
    emb = t_ref[...] * freqs_ref[...] + phase_ref[...]          # (TB, C)
    o_ref[...] = jnp.sin(emb).astype(o_ref.dtype)


def _round_up(x, m):
    return (x + m - 1) // m * m


def timesteps_embedding(timesteps, num_channels=320):
    """Equivalent of Timesteps.forward: (B,) -> (B, 2*(num_channels//2))."""
    B = timesteps.shape[0]
    half = num_channels // 2
    C = 2 * half                                   # matches torch.cat width

    t = timesteps.astype(jnp.float32).reshape(B, 1)

    # Hoisted per-lane tables: freqs repeated for both halves, phase selects
    # cos (pi/2 shift) for the first half and sin (0) for the second.
    k = jnp.arange(half, dtype=jnp.float32)
    freqs_half = jnp.exp((-math.log(10000.0) / half) * k)
    freqs = jnp.concatenate([freqs_half, freqs_half]).reshape(1, C)
    phase = jnp.concatenate(
        [jnp.full((half,), math.pi / 2.0, dtype=jnp.float32),
         jnp.zeros((half,), dtype=jnp.float32)]).reshape(1, C)

    # Batch tile: big enough to amortize per-step overhead, but capped at
    # ceil(B/2) (sublane-aligned) so large batches keep >= 2 parallel grid
    # steps for dual-TensorCore (v7x) sharding.  VMEM is never a concern:
    # a (1024, C) f32 block is ~1.25 MB at C=320.
    TB = min(1024, _round_up(pl.cdiv(B, 2), 8))
    grid = (pl.cdiv(B, TB),)

    cost = pl.CostEstimate(
        flops=2 * B * C,                # mul + add per element
        transcendentals=B * C,          # one sin per element
        bytes_accessed=B * 4 + 2 * C * 4 + B * C * 4,
    )

    out = pl.pallas_call(
        timesteps_kernel,
        out_shape=jax.ShapeDtypeStruct((B, C), jnp.float32),
        grid_spec=pltpu.PrefetchScalarGridSpec(
            num_scalar_prefetch=0,
            grid=grid,
            in_specs=[
                pl.BlockSpec((TB, 1), lambda i: (i, 0)),   # timesteps tile
                pl.BlockSpec((1, C), lambda i: (0, 0)),    # freqs (resident)
                pl.BlockSpec((1, C), lambda i: (0, 0)),    # phase (resident)
            ],
            out_specs=pl.BlockSpec((TB, C), lambda i: (i, 0)),
        ),
        compiler_params=pltpu.CompilerParams(
            dimension_semantics=("parallel",)),
        cost_estimate=cost,
    )(t, freqs, phase)
    return out


def _reference(timesteps, num_channels=320):
    """Pure-JAX transcription of the PyTorch forward (for correctness check)."""
    half = num_channels // 2
    exponent = -math.log(10000.0) * jnp.arange(half, dtype=jnp.float32) / half
    freqs = jnp.exp(exponent)
    emb = timesteps.astype(jnp.float32)[:, None] * freqs[None, :]
    return jnp.concatenate([jnp.cos(emb), jnp.sin(emb)], axis=-1)


if __name__ == "__main__":
    # Small shapes consistent with the module: batch=2, num_channels=320.
    B, num_channels = 2, 320
    key = jax.random.PRNGKey(0)
    timesteps = jax.random.randint(key, (B,), 0, 1000).astype(jnp.int32)

    out = timesteps_embedding(timesteps, num_channels)
    out = jax.block_until_ready(out)

    ref = _reference(timesteps, num_channels)
    assert out.shape == (B, num_channels), out.shape
    if not jnp.allclose(out, ref, atol=1e-3, rtol=1e-3):
        raise AssertionError("Pallas Timesteps kernel does not match reference")

    print("KERNEL_OK")
</pallas_src>

<mosaic_0001>
module attributes {stable_mosaic.version = 11 : i64} {
  func.func @timesteps_kernel(%arg0: i32, %arg1: memref<8x1xf32, #tpu.memory_space<vmem>>, %arg2: memref<1x320xf32, #tpu.memory_space<vmem>>, %arg3: memref<1x320xf32, #tpu.memory_space<vmem>>, %arg4: memref<8x320xf32, #tpu.memory_space<vmem>>) attributes {dimension_semantics = [#tpu.dimension_semantics<parallel>], iteration_bounds = array<i64: 1>, scalar_prefetch = 0 : i64, scratch_operands = 0 : i64, tpu.core_type = #tpu.core_type<tc>, window_params = [{transform_indices = @transform_0, window_bounds = array<i64: 8, 1>}, {pipeline_mode = #tpu.pipeline_mode<synchronous>, transform_indices = @transform_1, window_bounds = array<i64: 1, 320>}, {pipeline_mode = #tpu.pipeline_mode<synchronous>, transform_indices = @transform_2, window_bounds = array<i64: 1, 320>}, {transform_indices = @transform_3, window_bounds = array<i64: 8, 320>}]} {
    %c0 = arith.constant 0 : index
    %c0_0 = arith.constant 0 : index
    %0 = vector.load %arg1[%c0, %c0_0] : memref<8x1xf32, #tpu.memory_space<vmem>>, vector<8x1xf32>
    %c0_1 = arith.constant 0 : index
    %c0_2 = arith.constant 0 : index
    %1 = vector.load %arg2[%c0_1, %c0_2] : memref<1x320xf32, #tpu.memory_space<vmem>>, vector<1x320xf32>
    %2 = vector.broadcast %0 : vector<8x1xf32> to vector<8x320xf32>
    %3 = vector.broadcast %1 : vector<1x320xf32> to vector<8x320xf32>
    %4 = arith.mulf %2, %3 : vector<8x320xf32>
    %c0_3 = arith.constant 0 : index
    %c0_4 = arith.constant 0 : index
    %5 = vector.load %arg3[%c0_3, %c0_4] : memref<1x320xf32, #tpu.memory_space<vmem>>, vector<1x320xf32>
    %6 = vector.broadcast %5 : vector<1x320xf32> to vector<8x320xf32>
    %7 = arith.addf %4, %6 : vector<8x320xf32>
    %8 = math.sin %7 : vector<8x320xf32>
    %c0_5 = arith.constant 0 : index
    %c0_6 = arith.constant 0 : index
    %9 = vector.load %arg4[%c0_5, %c0_6] : memref<8x320xf32, #tpu.memory_space<vmem>>, vector<8x320xf32>
    tpu.vector_store %arg4[%c0_5, %c0_6], %8 {strides = array<i32>} : memref<8x320xf32, #tpu.memory_space<vmem>>, vector<8x320xf32>,
    return
  }
  func.func @transform_0(%arg0: i32) -> (i32, i32) {
    %c0_i32 = arith.constant 0 : i32
    %c0_i32_0 = arith.constant 0 : i32
    return %arg0, %c0_i32 : i32, i32
  }
  func.func @transform_1(%arg0: i32) -> (i32, i32) {
    %c0_i32 = arith.constant 0 : i32
    %c0_i32_0 = arith.constant 0 : i32
    %c0_i32_1 = arith.constant 0 : i32
    return %c0_i32, %c0_i32_0 : i32, i32
  }
  func.func @transform_2(%arg0: i32) -> (i32, i32) {
    %c0_i32 = arith.constant 0 : i32
    %c0_i32_0 = arith.constant 0 : i32
    %c0_i32_1 = arith.constant 0 : i32
    return %c0_i32, %c0_i32_0 : i32, i32
  }
  func.func @transform_3(%arg0: i32) -> (i32, i32) {
    %c0_i32 = arith.constant 0 : i32
    %c0_i32_0 = arith.constant 0 : i32
    return %arg0, %c0_i32 : i32, i32
  }
}

</mosaic_0001>

<bundles_post_ra>
// kernel: tpu_custom_call.1
= control target key start
LH: loop header
LB: loop body
LE: loop exit
PB: predicated region body
PF: predicated region fallthrough
CT: control target
= control target key end

     0   :  { %s765_s0 = inlined_call_operand.vmem [shape: f32[2,1], index: 0, kind: input, shape index: {}]   ;;  %s766_s1 = inlined_call_operand.vmem [shape: f32[1,320], index: 1, kind: input, shape index: {}]   ;;  %s767_s2 = inlined_call_operand.vmem [shape: f32[1,320], index: 2, kind: input, shape index: {}]   ;;  %s768_s3 = inlined_call_operand.hbm [shape: f32[2,320], index: 3, kind: output, shape index: {}]  }
   0x1   :  { %v15_v0 = vld [vmem:[%s765_s0] sm:$0xff] }
   0x2   :  { %8 = vsyncpa [#allocation3], 0  ;;  %v512_v1 = vmov 0   ;;  %v23_v2 = vlaneseq  ;;  %v16_v7 = vld [vmem:[%s766_s1] sm:$0x7] }
   0x3   :  { %475 = vset.pattern.permute.xlu0 %v512_v1  ;;  %v41_v8 = vld [vmem:[%s767_s2] sm:$0x7]  ;;  %v513_v47 = vmov 683565275   ;;  %v514_v51 = vmov 2475754826  }
   0x4   :  { %19 = vperm.xlu0 %475, %v15_v0   ;;  %v546_v3 = vshrl.u32 %v23_v2, 7  ;;  %v515_v53 = vmov 2131351028   ;;  %v516_v55 = vmov 2102212464  }
   0x5   :  { %v517_v57 = vmov 920167782   ;;  %v518_v0 = vmov 1326507024  }
   0x6   :  { %v25_v4 = vsub.s32 0, %v546_v3  ;;  %v29_v5 = vsub.s32 1, %v546_v3  ;;  %v33_v6 = vsub.s32 2, %v546_v3 }
   0x8   :  { %v26_v9 = vrot.slane %v16_v7, %v25_v4  ;;  %v30_v10 = vrot.slane %v16_v7, %v29_v5  ;;  %v34_v11 = vrot.slane %v16_v7, %v33_v6  ;;  %v46_v12 = vrot.slane %v41_v8, %v25_v4 }
   0x9   :  { %v50_v13 = vrot.slane %v41_v8, %v29_v5  ;;  %v54_v15 = vrot.slane %v41_v8, %v33_v6 }
  0x83   :  { %v20_v14 = vpop.permute.xlu0 %19 }
  0x84   :  { %v38_v16 = vmul.f32 %v26_v9, %v20_v14  ;;  %v39_v17 = vmul.f32 %v30_v10, %v20_v14  ;;  %v40_v18 = vmul.f32 %v34_v11, %v20_v14 }
  0x86   :  { %v557_v19 = vadd.f32 %v46_v12, %v38_v16  ;;  %v559_v20 = vadd.f32 %v50_v13, %v39_v17  ;;  %v561_v21 = vadd.f32 %v54_v15, %v40_v18 }
  0x88   :  { %v61_v22 = vand.u32 2147483647, %v557_v19  ;;  %v64_v23 = vand.u32 2139095040, %v557_v19  ;;  %v165_v24 = vand.u32 2147483647, %v559_v20  ;;  %v168_v25 = vand.u32 2139095040, %v559_v20 }
  0x89   :  { %v272_v30 = vand.u32 2139095040, %v561_v21 }
  0x8a   :  { %v65_v26 = vshrl.u32 %v64_v23, 23  ;;  %v68_v27 = vand.u32 8388607, %v61_v22  ;;  %v169_v28 = vshrl.u32 %v168_v25, 23  ;;  %v172_v29 = vand.u32 8388607, %v165_v24 }
  0x8b   :  { %v273_v33 = vshrl.u32 %v272_v30, 23 }
  0x8c   :  { %v440_v31 = vadd.s32 4294967169, %v65_v26  ;;  %v444_v32 = vadd.s32 4294967169, %v169_v28  ;;  %v69_v35 = vor.u32 8388608, %v68_v27  ;;  %v173_v36 = vor.u32 8388608, %v172_v29 }
  0x8d   :  { %v448_v38 = vadd.s32 4294967169, %v273_v33 }
  0x8e   :  { %v71_v34 = vadd.s32 1, %v440_v31  ;;  %v175_v37 = vadd.s32 1, %v444_v32  ;;  %v572_v43 = vshll.u32 %v69_v35, 8  ;;  %v574_v44 = vshll.u32 %v173_v36, 8 }
  0x8f   :  { %v576_v45 = vadd.s32 1, %v448_v38 }
  0x90   :  { %vm72_vm0 = vcmp.gt.s32.totalorder %v71_v34, 0  ;;  %vm176_vm1 = vcmp.gt.s32.totalorder %v175_v37, 0 }
  0x91   :  { %v73_v39 = vsel %vm72_vm0, %v71_v34, 0  ;;  %v177_v42 = vsel %vm176_vm1, %v175_v37, 0  ;;  %vm280_vm6 = vcmp.gt.s32.totalorder %v576_v45, 0 }
  0x92   :  { %v74_v40 = vshrl.u32 %v73_v39, 5  ;;  %v75_v41 = vand.u32 31, %v73_v39  ;;  %v579_v49 = vshrl.u32 %v177_v42, 5  ;;  %v179_v50 = vand.u32 31, %v177_v42 }
  0x94   :  { %v76_v46 = vsub.s32 32, %v75_v41  ;;  %v78_v48 = vshll.u32 %v513_v47, %v75_v41  ;;  %v81_v52 = vshll.u32 %v514_v51, %v75_v41  ;;  %v84_v54 = vshll.u32 %v515_v53, %v75_v41 }
  0x95   :  { %v87_v56 = vshll.u32 %v516_v55, %v75_v41  ;;  %v90_v58 = vshll.u32 %v517_v57, %v75_v41  ;;  %vm93_vm2 = vcmp.lt.s32.totalorder %v74_v40, 1  ;;  %vm94_vm3 = vcmp.lt.s32.totalorder %v74_v40, 2 }
  0x96   :  { %v79_v59 = vshrl.u32 %v514_v51, %v76_v46  ;;  %v82_v60 = vshrl.u32 %v515_v53, %v76_v46  ;;  %v85_v61 = vshrl.u32 %v516_v55, %v76_v46  ;;  %v77_v62 = vshrl.u32 %v513_v47, %v76_v46 }
  0x97   :  { %v88_v63 = vshrl.u32 %v517_v57, %v76_v46  ;;  %v91_v1 = vshrl.u32 %v518_v0, %v76_v46  ;;  %v180_v6 = vsub.s32 32, %v179_v50  ;;  %vm95_vm4 = vcmp.lt.s32.totalorder %v74_v40, 3 }
  0x98   :  { %v80_v2 = vor.u32 %v79_v59, %v78_v48  ;;  %v83_v4 = vor.u32 %v82_v60, %v81_v52  ;;  %v86_v5 = vor.u32 %v85_v61, %v84_v54  ;;  %vm96_vm5 = vcmp.lt.s32.totalorder %v74_v40, 4 }
  0x99   :  { %v89_v7 = vor.u32 %v88_v63, %v87_v56  ;;  %v92_v8 = vor.u32 %v91_v1, %v90_v58  ;;  %v182_v16 = vshll.u32 %v513_v47, %v179_v50  ;;  %v183_v23 = vshrl.u32 %v514_v51, %v180_v6 }
  0x9a   :  { %v97_v9 = vsel %vm93_vm2, %v77_v62, %v80_v2  ;;  %v98_v10 = vsel %vm96_vm5, %v86_v5, 2102212464  ;;  %v101_v11 = vsel %vm93_vm2, %v80_v2, %v83_v4  ;;  %v105_v12 = vsel %vm93_vm2, %v83_v4, %v86_v5 }
  0x9b   :  { %v99_v13 = vsel %vm95_vm4, %v83_v4, %v98_v10  ;;  %v102_v14 = vsel %vm96_vm5, %v89_v7, 920167782  ;;  %v106_v15 = vsel %vm96_vm5, %v92_v8, 1326507024  ;;  %v185_v25 = vshll.u32 %v514_v51, %v179_v50 }
  0x9c   :  { %v103_v17 = vsel %vm95_vm4, %v86_v5, %v102_v14  ;;  %v107_v18 = vsel %vm95_vm4, %v89_v7, %v106_v15  ;;  %v100_v26 = vsel %vm94_vm3, %v97_v9, %v99_v13  ;;  %v186_v29 = vshrl.u32 %v515_v53, %v180_v6 }
  0x9d   :  { %v104_v27 = vsel %vm94_vm3, %v101_v11, %v103_v17  ;;  %v108_v28 = vsel %vm94_vm3, %v105_v12, %v107_v18  ;;  %v184_v34 = vor.u32 %v183_v23, %v182_v16  ;;  %v188_v36 = vshll.u32 %v515_v53, %v179_v50 }
  0x9e   :  { %v603_v30 = vmul.u32.u64.low %v572_v43, %v108_v28  ;;  %v604_v31 = vmul.u32.u64.high %v572_v43, %v108_v28, %v603_v30  ;;  %v607_v32 = vmul.u32.u64.low %v572_v43, %v104_v27  ;;  %v608_v33 = vmul.u32.u64.high %v572_v43, %v104_v27, %v607_v32 }
  0x9f   :  { %v187_v35 = vor.u32 %v186_v29, %v185_v25  ;;  %v189_v37 = vshrl.u32 %v516_v55, %v180_v6  ;;  %v181_v38 = vshrl.u32 %v513_v47, %v180_v6  ;;  %v191_v39 = vshll.u32 %v516_v55, %v179_v50 }
  0xa0   :  { %v192_v40 = vshrl.u32 %v517_v57, %v180_v6  ;;  %v195_v41 = vshrl.u32 %v518_v0, %v180_v6  ;;  %v116_v42 = vmul.u32 %v572_v43, %v100_v26  ;;  %v194_v48 = vshll.u32 %v517_v57, %v179_v50 }
  0xa1   :  { %v190_v46 = vor.u32 %v189_v37, %v188_v36  ;;  %vm197_vm7 = vcmp.lt.s32.totalorder %v579_v49, 1  ;;  %vm118_vm8 = vc.u32 %v604_v31, %v607_v32  ;;  %v119_v52 = vadd.s32 1, %v608_v33 }
  0xa2   :  { %v193_v54 = vor.u32 %v192_v40, %v191_v39  ;;  %vm198_vm9 = vcmp.lt.s32.totalorder %v579_v49, 2  ;;  %v196_v56 = vor.u32 %v195_v41, %v194_v48  ;;  %vm199_vm10 = vcmp.lt.s32.totalorder %v579_v49, 3 }
  0xa3   :  { %vm200_vm11 = vcmp.lt.s32.totalorder %v579_v49, 4  ;;  %v205_v58 = vsel %vm197_vm7, %v184_v34, %v187_v35  ;;  %v120_v43 = vsel %vm118_vm8, %v119_v52, %v608_v33  ;;  %v209_v60 = vsel %vm197_vm7, %v187_v35, %v190_v46 }
  0xa4   :  { %v202_v59 = vsel %vm200_vm11, %v190_v46, 2102212464  ;;  %v206_v50 = vsel %vm200_vm11, %v193_v54, 920167782  ;;  %v121_v61 = vadd.s32 %v120_v43, %v116_v42  ;;  %v201_v62 = vsel %vm197_vm7, %v181_v38, %v184_v34 }
  0xa5   :  { %v207_v63 = vsel %vm199_vm10, %v190_v46, %v206_v50  ;;  %v210_v1 = vsel %vm200_vm11, %v196_v56, 1326507024  ;;  %v203_v2 = vsel %vm199_vm10, %v187_v35, %v202_v59  ;;  %v281_v6 = vsel %vm280_vm6, %v576_v45, 0 }
  0xa6   :  { %v208_v4 = vsel %vm198_vm9, %v205_v58, %v207_v63  ;;  %v211_v5 = vsel %vm199_vm10, %v193_v54, %v210_v1  ;;  %v122_v7 = vadd.s32 536870912, %v121_v61  ;;  %v204_v14 = vsel %vm198_vm9, %v201_v62, %v203_v2 }
  0xa7   :  { %v212_v8 = vsel %vm198_vm9, %v209_v60, %v211_v5  ;;  %v635_v9 = vmul.u32.u64.low %v574_v44, %v208_v4  ;;  %v636_v10 = vmul.u32.u64.high %v574_v44, %v208_v4, %v635_v9  ;;  %v283_v15 = vand.u32 31, %v281_v6 }
  0xa8   :  { %v640_v11 = vmul.u32.u64.low %v574_v44, %v212_v8  ;;  %v641_v12 = vmul.u32.u64.high %v574_v44, %v212_v8, %v640_v11  ;;  %v643_v13 = vshrl.u32 %v122_v7, 30  ;;  %v220_v18 = vmul.u32 %v574_v44, %v204_v14 }
  0xa9   :  { %v223_v16 = vadd.s32 1, %v636_v10  ;;  %v284_v17 = vsub.s32 32, %v283_v15  ;;  %v269_v23 = vand.u32 2147483647, %v561_v21  ;;  %v282_v33 = vshrl.u32 %v281_v6, 5 }
  0xaa   :  { %v124_v45 = vshll.u32 %v643_v13, 30  ;;  %vm222_vm12 = vc.u32 %v641_v12, %v635_v9  ;;  %v286_v36 = vshll.u32 %v513_v47, %v283_v15  ;;  %v289_v37 = vshll.u32 %v514_v51, %v283_v15 }
  0xab   :  { %v224_v26 = vsel %vm222_vm12, %v223_v16, %v636_v10  ;;  %v287_v28 = vshrl.u32 %v514_v51, %v284_v17  ;;  %v290_v29 = vshrl.u32 %v515_v53, %v284_v17  ;;  %v276_v44 = vand.u32 8388607, %v269_v23 }
  0xac   :  { %v653_v25 = vsub.s32 %v121_v61, %v124_v45  ;;  %v225_v27 = vadd.s32 %v224_v26, %v220_v18  ;;  %v293_v34 = vshrl.u32 %v516_v55, %v284_v17  ;;  %v296_v38 = vshrl.u32 %v517_v57, %v284_v17 }
  0xad   :  { %v292_v40 = vshll.u32 %v515_v53, %v283_v15  ;;  %v295_v41 = vshll.u32 %v516_v55, %v283_v15  ;;  %v299_v42 = vshrl.u32 %v518_v0, %v284_v17  ;;  %v288_v48 = vor.u32 %v287_v28, %v286_v36 }
  0xae   :  { %v127_v49 = vsub.s32 0, %v653_v25  ;;  %v226_v30 = vadd.s32 536870912, %v225_v27  ;;  %v291_v52 = vor.u32 %v290_v29, %v289_v37  ;;  %v298_v54 = vshll.u32 %v517_v57, %v283_v15 }
  0xaf   :  { %v294_v58 = vor.u32 %v293_v34, %v292_v40  ;;  %v297_v43 = vor.u32 %v296_v38, %v295_v41  ;;  %v277_v59 = vor.u32 8388608, %v276_v44  ;;  %vm304_vm13 = vcmp.lt.s32.totalorder %v282_v33, 4 }
  0xb0   :  { %v441_v35 = vmin.u32 %v127_v49, %v653_v25  ;;  %v666_v39 = vshrl.u32 %v226_v30, 30  ;;  %v300_v50 = vor.u32 %v299_v42, %v298_v54  ;;  %vm301_vm14 = vcmp.lt.s32.totalorder %v282_v33, 1 }
  0xb1   :  { %v310_v53 = vsel %vm304_vm13, %v297_v43, 920167782  ;;  %vm303_vm0 = vcmp.lt.s32.totalorder %v282_v33, 3  ;;  %v309_v55 = vsel %vm301_vm14, %v288_v48, %v291_v52  ;;  %v313_v62 = vsel %vm301_vm14, %v291_v52, %v294_v58 }
  0xb2   :  { %v129_v46 = vclz %v441_v35  ;;  %v228_v56 = vshll.u32 %v666_v39, 30  ;;  %v311_v57 = vsel %vm303_vm0, %v294_v58, %v310_v53  ;;  %vm302_vm1 = vcmp.lt.s32.totalorder %v282_v33, 2 }
  0xb3   :  { %v314_v1 = vsel %vm304_vm13, %v300_v50, 1326507024  ;;  %v317_v2 = vshll.u32 %v277_v59, 8  ;;  %v285_v5 = vshrl.u32 %v513_v47, %v284_v17  ;;  %v306_v6 = vsel %vm304_vm13, %v294_v58, 2102212464 }
  0xb4   :  { %v442_v51 = vadd.s32 4294967294, %v129_v46  ;;  %v229_v60 = vsub.s32 %v225_v27, %v228_v56  ;;  %v315_v7 = vsel %vm303_vm0, %v297_v43, %v314_v1  ;;  %v312_v11 = vsel %vm302_vm1, %v309_v55, %v311_v57 }
  0xb5   :  { %v316_v14 = vsel %vm302_vm1, %v313_v62, %v315_v7  ;;  %v117_v15 = vadd.s32 %v607_v32, %v604_v31  ;;  %v305_v16 = vsel %vm301_vm14, %v285_v5, %v288_v48  ;;  %v307_v26 = vsel %vm303_vm0, %v291_v52, %v306_v6 }
  0xb6   :  { %vm443_vm15 = vcmp.lt.s32.totalorder %v442_v51, 0  ;;  %v231_v61 = vsub.s32 0, %v229_v60  ;;  %v687_v47 = vmul.u32.u64.low %v317_v2, %v316_v14  ;;  %v688_v17 = vmul.u32.u64.high %v317_v2, %v316_v14, %v687_v47 }
  0xb7   :  { %v132_v0 = vsel %vm443_vm15, 0, %v442_v51  ;;  %v690_v49 = vmul.u32.u64.low %v317_v2, %v312_v11  ;;  %v691_v28 = vmul.u32.u64.high %v317_v2, %v312_v11, %v690_v49  ;;  %v308_v30 = vsel %vm302_vm1, %v305_v16, %v307_v26 }
  0xb8   :  { %v137_v63 = vsub.s32 4294967266, %v132_v0  ;;  %v445_v4 = vmin.u32 %v231_v61, %v229_v60  ;;  %v133_v8 = vsub.s32 32, %v132_v0  ;;  %v134_v44 = vshll.u32 %v653_v25, %v132_v0 }
  0xb9   :  { %vm326_vm3 = vc.u32 %v688_v17, %v690_v49  ;;  %v221_v34 = vadd.s32 %v635_v9, %v641_v12  ;;  %v327_v37 = vadd.s32 1, %v691_v28  ;;  %v324_v40 = vmul.u32 %v317_v2, %v308_v30 }
  0xba   :  { %v138_v10 = vadd.s32 127, %v137_v63  ;;  %v233_v45 = vclz %v445_v4  ;;  %v135_v29 = vshrl.u32 %v117_v15, %v133_v8  ;;  %vm63_vm4 = vcmp.lt.s32.totalorder %v557_v19, 0 }
  0xbb   :  { %v328_v33 = vsel %vm326_vm3, %v327_v37, %v691_v28  ;;  %vm167_vm5 = vcmp.lt.s32.totalorder %v559_v20, 0  ;;  %vm706_vm6 = vcmp.le.f32.partialorder %v61_v22, 0.7853982  ;;  %vm717_vm7 = vcmp.le.f32.partialorder %v165_v24, 0.7853982 }
  0xbc   :  { %v139_v18 = vshll.u32 %v138_v10, 23  ;;  %v446_v27 = vadd.s32 4294967294, %v233_v45  ;;  %v136_v38 = vor.u32 %v135_v29, %v134_v44  ;;  %v329_v25 = vadd.s32 %v328_v33, %v324_v40 }
  0xbd   :  { %v147_v7 = vsub.s32 4, %v643_v13  ;;  %v251_v8 = vsub.s32 4, %v666_v39  ;;  %v325_v11 = vadd.s32 %v690_v49, %v688_v17  ;;  %vm271_vm9 = vcmp.lt.s32.totalorder %v561_v21, 0 }
  0xbe   :  { %vm447_vm2 = vcmp.lt.s32.totalorder %v446_v27, 0  ;;  %v140_v31 = vor.u32 4788187, %v139_v18  ;;  %v143_v56 = vcvt.s32.f32 %v136_v38  ;;  %v330_v58 = vadd.s32 536870912, %v329_v25 }
  0xbf   :  { %v236_v32 = vsel %vm447_vm2, 0, %v446_v27  ;;  %v148_v15 = vsel %vm63_vm4, %v147_v7, %v643_v13  ;;  %v252_v26 = vsel %vm167_vm5, %v251_v8, %v666_v39  ;;  %vm740_vm10 = vcmp.le.f32.partialorder %v269_v23, 0.7853982 }
  0xc0   :  { %v237_v35 = vsub.s32 32, %v236_v32  ;;  %v241_v36 = vsub.s32 4294967266, %v236_v32  ;;  %v238_v41 = vshll.u32 %v229_v60, %v236_v32  ;;  %v141_v48 = vand.u32 2147483647, %v140_v31 }
  0xc1   :  { %v331_v9 = vshrl.u32 %v330_v58, 30  ;;  %v150_v28 = vsel %vm706_vm6, 0, %v148_v15  ;;  %v254_v17 = vsel %vm717_vm7, 0, %v252_v26  ;;  %vm153_vm1 = vweird.f32 %v557_v19 }
  0xc2   :  { %v239_v42 = vshrl.u32 %v221_v34, %v237_v35  ;;  %v242_v46 = vadd.s32 127, %v241_v36  ;;  %v144_v51 = vmul.f32 %v143_v56, %v141_v48  ;;  %v154_v30 = vadd.s32 3, %v150_v28 }
  0xc3   :  { %v332_v50 = vshll.u32 %v331_v9, 30  ;;  %v258_v32 = vadd.s32 3, %v254_v17  ;;  %v355_v34 = vsub.s32 4, %v331_v9  ;;  %vm257_vm2 = vweird.f32 %v559_v20 }
  0xc4   :  { %v240_v52 = vor.u32 %v239_v42, %v238_v41  ;;  %v243_v54 = vshll.u32 %v242_v46, 23  ;;  %v145_v55 = vxor.u32 2147483648, %v144_v51  ;;  %v155_v39 = vand.u32 3, %v154_v30 }
  0xc5   :  { %v333_v0 = vsub.s32 %v329_v25, %v332_v50  ;;  %v259_v41 = vand.u32 3, %v258_v32  ;;  %v356_v46 = vsel %vm271_vm9, %v355_v34, %v331_v9  ;;  %v519_v50 = vmov 1983009808  }
  0xc6   :  { %v244_v43 = vor.u32 4788187, %v243_v54  ;;  %v247_v59 = vcvt.s32.f32 %v240_v52  ;;  %v146_v57 = vsel %vm63_vm4, %v145_v55, %v144_v51  ;;  %vm157_vm11 = vcmp.eq.s32.totalorder %v155_v39, 0 }
  0xc7   :  { %v335_v61 = vsub.s32 0, %v333_v0  ;;  %v149_v4 = vsel %vm706_vm6, %v557_v19, %v146_v57  ;;  %vm160_vm12 = vcmp.eq.s32.totalorder %v155_v39, 2  ;;  %vm261_vm13 = vcmp.eq.s32.totalorder %v259_v41, 0 }
  0xc8   :  { %v245_v12 = vand.u32 2147483647, %v244_v43  ;;  %476 = vcosq.f32 %v149_v4  ;;  %vm264_vm14 = vcmp.eq.s32.totalorder %v259_v41, 2  ;;  %v358_v23 = vsel %vm740_vm10, 0, %v356_v46 }
  0xc9   :  { %v449_v62 = vmin.u32 %v335_v61, %v333_v0  ;;  %478 = vsinq.f32 %v149_v4  ;;  %vm156_vm15 = vcmp.lt.s32.totalorder %v155_v39, 2  ;;  %vm260_vm0 = vcmp.lt.s32.totalorder %v259_v41, 2 }
  0xca   :  { %v248_v53 = vmul.f32 %v247_v59, %v245_v12  ;;  %v362_v9 = vadd.s32 3, %v358_v23  ;;  %vm415_vm4 = vcmask 1041408  }
  0xcb   :  { %v337_v2 = vclz %v449_v62 }
  0xcc   :  { %v249_v60 = vxor.u32 2147483648, %v248_v53 }
  0xcd   :  { %v450_v6 = vadd.s32 4294967294, %v337_v2 }
  0xce   :  { %v250_v1 = vsel %vm167_vm5, %v249_v60, %v248_v53  ;;  %v380_v53 = vunpack.c.l.s4 %v519_v50  ;;  %v363_v60 = vand.u32 3, %v362_v9  ;;  %vm416_vm5 = vcmask 1043458  }
  0xcf   :  { %v253_v22 = vsel %vm717_vm7, %v559_v20, %v250_v1  ;;  %vm451_vm8 = vcmp.lt.s32.totalorder %v450_v6, 0 }
  0xd0   :  { %v340_v10 = vsel %vm451_vm8, 0, %v450_v6  ;;  %480 = vcosq.f32 %v253_v22  ;;  %v381_v61 = vunpack.c.0.s8 %v380_v53  ;;  %vm368_vm3 = vcmp.eq.s32.totalorder %v363_v60, 2 }
  0xd1   :  { %v341_v24 = vsub.s32 32, %v340_v10  ;;  %v345_v14 = vsub.s32 4294967266, %v340_v10  ;;  %482 = vsinq.f32 %v253_v22  ;;  %v342_v45 = vshll.u32 %v333_v0, %v340_v10 }
  0xd2   :  { %v477_v29 = vpop.eup %476  ;;  %vm365_vm6 = vcmp.eq.s32.totalorder %v363_v60, 0  ;;  %v384_v6 = vsub.s32 %v381_v61, %v546_v3  ;;  %vm364_vm7 = vcmp.lt.s32.totalorder %v363_v60, 2  ;;  %vm361_vm8 = vweird.f32 %v561_v21 }
  0xd3   :  { %v343_v16 = vshrl.u32 %v325_v11, %v341_v24  ;;  %v346_v18 = vadd.s32 127, %v345_v14  ;;  %v479_v31 = vpop.eup %478  ;;  %v161_v40 = vxor.u32 2147483648, %v477_v29 }
  0xd4   :  { %v158_v33 = vxor.u32 2147483648, %v479_v31 }
  0xd5   :  { %v344_v47 = vor.u32 %v343_v16, %v342_v45  ;;  %v347_v27 = vshll.u32 %v346_v18, 23  ;;  %v162_v58 = vsel %vm160_vm12, %v161_v40, %v479_v31 }
  0xd6   :  { %v159_v56 = vsel %vm157_vm11, %v477_v29, %v158_v33 }
  0xd7   :  { %v348_v49 = vor.u32 4788187, %v347_v27  ;;  %v351_v13 = vcvt.s32.f32 %v344_v47  ;;  %v163_v12 = vsel %vm156_vm15, %v159_v56, %v162_v58 }
  0xd8   :  { %v164_v55 = vsel %vm153_vm1, nan, %v163_v12 }
  0xd9   :  { %v349_v44 = vand.u32 2147483647, %v348_v49 }
  0xda   :  { %v481_v35 = vpop.eup %480 }
  0xdb   :  { %v352_v36 = vmul.f32 %v351_v13, %v349_v44  ;;  %v483_v37 = vpop.eup %482  ;;  %v265_v25 = vxor.u32 2147483648, %v481_v35 }
  0xdc   :  { %v262_v48 = vxor.u32 2147483648, %v483_v37 }
  0xdd   :  { %v353_v38 = vxor.u32 2147483648, %v352_v36  ;;  %v266_v51 = vsel %vm264_vm14, %v265_v25, %v483_v37 }
  0xde   :  { %v263_v43 = vsel %vm261_vm13, %v481_v35, %v262_v48 }
  0xdf   :  { %v354_v52 = vsel %vm271_vm9, %v353_v38, %v352_v36  ;;  %v267_v59 = vsel %vm260_vm0, %v263_v43, %v266_v51  ;;  %vm417_vm9 = vmor %vm416_vm5, %vm415_vm4 }
  0xe0   :  { %v357_v54 = vsel %vm740_vm10, %v561_v21, %v354_v52  ;;  %v268_v0 = vsel %vm257_vm2, nan, %v267_v59  ;;  %vm418_vm10 = vcmask 521220  }
  0xe1   :  { %484 = vcosq.f32 %v357_v54  ;;  %v376_v1 = vcombine.low %v164_v55, %v268_v0  ;;  %v377_v5 = vcombine.high %v164_v55, %v268_v0  ;;  %vm419_vm11 = vmor %vm418_vm10, %vm417_vm9 }
  0xe2   :  { %486 = vsinq.f32 %v357_v54 }
  0xe3   :  { %v385_v22 = vrot.slane %v376_v1, %v384_v6  ;;  %v392_v10 = vrot.slane %v377_v5, %v384_v6 }
  0xeb   :  { %v485_v57 = vpop.eup %484 }
  0xec   :  { %v487_v62 = vpop.eup %486  ;;  %v369_v63 = vxor.u32 2147483648, %v485_v57 }
  0xed   :  { %v366_v2 = vxor.u32 2147483648, %v487_v62 }
  0xee   :  { %v370_v4 = vsel %vm368_vm3, %v369_v63, %v487_v62 }
  0xef   :  { %v367_v19 = vsel %vm365_vm6, %v485_v57, %v366_v2 }
  0xf0   :  { %v371_v20 = vsel %vm364_vm7, %v367_v19, %v370_v4 }
  0xf1   :  { %v372_v7 = vsel %vm361_vm8, nan, %v371_v20 }
  0xf2   :  { %v378_v8 = vcombine.high %v372_v7, %v372_v7  ;;  %v399_v11 = vrot.slane %v372_v7, %v384_v6 }
  0xf4   :  { %v406_v24 = vrot.slane %v378_v8, %v384_v6  ;;  %v407_v14 = vcombine.low %v385_v22, %v399_v11  ;;  %v408_v15 = vcombine.high %v385_v22, %v399_v11 }
  0xf6   :  { %v409_v45 = vcombine.low %v392_v10, %v406_v24  ;;  %v410_v16 = vcombine.high %v392_v10, %v406_v24  ;;  %420 = vst.msk [vmem:[#allocation2] sm:$0x3f] %vm419_vm11, %v407_v14  ;;  %421 = vst.msk [vmem:[#allocation2 + $0x6] sm:$0x3f] %vm419_vm11, %v408_v15 }
  0xf8   :  { %422 = vst.msk [vmem:[#allocation2 + $0xc] sm:$0x3f] %vm419_vm11, %v409_v45  ;;  %423 = vst.msk [vmem:[#allocation2 + $0x12] sm:$0x3f] %vm419_vm11, %v410_v16 }
  0xf9   :  { %428 = vsyncadd [#allocation3], 288  ;;  %s520_s0 = smov [#allocation2]  }
  0xfa   :  { %s429_s1 = sshll.u32 %s520_s0, 4  ;;  %s430_s1 = int_to_ptr.vmem [resolvable:$true] %s429_s1 }
  0xfb   :  { %s488_s2 = scalar_lea.vmem %s430_s1, 96  ;;  %s492_s18 = scalar_lea.vmem %s430_s1, 384 }
  0xfc   :  { %p489_p0 = scmp.ne.s32.totalorder %s430_s1, %s488_s2  ;;  %p493_p1 = scmp.lt.s32.totalorder %s430_s1, %s430_s1 }
  0xfd   :  { %p494_p2 = scmp.lt.s32.totalorder %s492_s18, %s488_s2 }
  0xff   :  { %p495_p3 = por %p494_p2, %p493_p1 }
 0x101   :  { %p496_p4 = pnand %p495_p3, %p489_p0 }
 0x103   :  { %499 = shalt.err (!%p496_p4)
}
 0x104   :  { %s500_s21 = scalar_lea.hbm %s768_s3, 96 }
 0x105   :  { %p501_p5 = scmp.ne.s32.totalorder %s768_s3, %s500_s21  ;;  %p504_p6 = scmp.lt.u32.totalorder %s500_s21, %s768_s3 }
 0x107   :  { %p506_p7 = pnand %p504_p6, %p501_p5 }
 0x109   :  { %509 = shalt.err (!%p506_p7)
}
 0x10a   :  { %s521_s26 = smov 96   ;;  %s522_s27 = smov 6  }
 0x10b   :  { %435 = dma.vmem_to_hbm [thread:$0]  %s430_s1, 96, %s768_s3, [#allocation3], %s521_s26, %s521_s26, %s522_s27  }
 0x10c   :  { %510 = dma.done.wait [#allocation3], 384  }
 0x10d   :  { %511 = vsyncadd [#allocation3], 4294966912 }
 0x10e   :  { %439 = vsyncpa [#allocation3], 1 }

</bundles_post_ra>
